<compile_context>
chip_gen: v6e
topology: v6e:2x2x1
jax: 0.10.0
libtpu: 0.0.40
codegen_flags: <defaults>
</compile_context>

<pallas_src>
import jax
import jax.numpy as jnp
from jax.experimental import pallas as pl
from jax.experimental.pallas import tpu as pltpu


def _make_conv_relu_kernel(H, W, CK, Cout, KH, KW, pad, NB):
    HW = H * W
    taps = [(kh - pad, kw - pad) for kh in range(KH) for kw in range(KW)]

    def kernel(x_ref, w_ref, b_ref, o_ref):
        # x_ref: (NB, CK, H*W)          flattened NCHW images (H*W on lanes)
        # w_ref: (Cout, KH*KW*CK)       fused im2col weight tile
        # b_ref: (Cout, 1)
        # o_ref: (NB, Cout, H*W)

        # Flat lane index + column index, hoisted once per grid step and
        # shared across all NB images and all taps.
        lane = jax.lax.broadcasted_iota(jnp.int32, (CK, HW), 1)
        if W & (W - 1) == 0:
            col = jnp.bitwise_and(lane, W - 1)                    # p % W
        else:
            col = lane % W

        # Per-tap validity masks (implicit conv zero-padding), hoisted.
        masks = []
        for (dh, dw) in taps:
            valid = None
            if dh > 0:
                valid = lane < (H - dh) * W
            elif dh < 0:
                valid = lane >= (-dh) * W
            if dw > 0:
                c = col < (W - dw)
                valid = c if valid is None else jnp.logical_and(valid, c)
            elif dw < 0:
                c = col >= (-dw)
                valid = c if valid is None else jnp.logical_and(valid, c)
            masks.append(valid)

        w = w_ref[...]                                            # (Cout, K*K*CK)
        b = b_ref[...]                                            # (Cout, 1)

        for nb in range(NB):                                      # unrolled
            x = x_ref[nb]                                         # (CK, HW)

            # Build the im2col matrix: 9 rolled+masked patches stacked on the
            # sublane axis (each patch is CK=8 rows -> tile-aligned concat).
            patches = []
            for t, (dh, dw) in enumerate(taps):
                shift = dh * W + dw
                if shift == 0:
                    patch = x
                else:
                    # patch[p] = x[p + shift] for in-bounds p (wraps masked).
                    patch = pltpu.roll(x, shift=(-shift) % HW, axis=1)
                if masks[t] is not None:
                    patch = jnp.where(masks[t], patch, 0.0)
                patches.append(patch)
            im2col = jnp.concatenate(patches, axis=0)             # (K*K*CK, HW)

            # Single fused MXU matmul per image (one push/pop, no MRF drain
            # per tap), f32 accumulate.
            acc = jnp.dot(w, im2col, preferred_element_type=jnp.float32)
            acc = acc + b                                         # (Cout,1) bcast
            o_ref[nb] = jnp.maximum(acc, 0.0).astype(o_ref.dtype)  # dense vst

    return kernel


def _default_images_per_block(N):
    """All N images per step on 1-TC chips (v5e/v6e); N//2 on 2-TC v7x so the
    'parallel' batch axis feeds both TensorCores."""
    two_tc = False
    try:
        kind = jax.devices()[0].device_kind.lower()
        two_tc = "v7" in kind
    except Exception:
        pass
    nb = N // 2 if (two_tc and N >= 2) else N
    nb = max(1, nb)
    while N % nb:
        nb -= 1
    return nb


def basic2d_forward(x_nchw, weight, bias, *, padding=1, images_per_block=None):
    """Conv2d(stride=1, padding=padding, bias=True) + ReLU, NCHW in/out."""
    N, Cin, H, W = x_nchw.shape
    Cout, Cin_w, KH, KW = weight.shape
    assert Cin_w == Cin
    HW = H * W

    NB = images_per_block if images_per_block is not None else _default_images_per_block(N)
    NB = max(1, min(NB, N))
    while N % NB:
        NB -= 1

    # Pad Cin up to the f32 sublane tile (8) so the in-kernel im2col concat is
    # tile-aligned; padded channels get zero weights (numerically a no-op).
    CK = -(-Cin // 8) * 8

    # Free row-major reshape; tiny channel zero-pad only when Cin % 8 != 0.
    x_flat = x_nchw.reshape(N, Cin, HW)
    if CK != Cin:
        x_flat = jnp.pad(x_flat, ((0, 0), (0, CK - Cin), (0, 0)))

    # (Cout,Cin,KH,KW) -> single lane-dense (Cout, KH*KW*CK) im2col weight tile.
    w_t = jnp.transpose(weight, (0, 2, 3, 1))                     # (Cout,KH,KW,Cin)
    if CK != Cin:
        w_t = jnp.pad(w_t, ((0, 0), (0, 0), (0, 0), (0, CK - Cin)))
    w_fused = w_t.reshape(Cout, KH * KW * CK)
    b2d = bias.reshape(Cout, 1)

    kernel = _make_conv_relu_kernel(H, W, CK, Cout, KH, KW, padding, NB)

    # TODO(synk): for large H*W add a second grid axis over H row-blocks with a
    # (KH-1)-row halo; size blocks against v7x's 64 MiB VMEM (not 128 MiB) and
    # keep rows_blk*W a multiple of 128 so stores stay dense unmasked vst.
    out_flat = pl.pallas_call(
        kernel,
        out_shape=jax.ShapeDtypeStruct((N, Cout, HW), x_nchw.dtype),
        grid_spec=pltpu.PrefetchScalarGridSpec(
            num_scalar_prefetch=0,
            grid=(N // NB,),
            in_specs=[
                pl.BlockSpec((NB, CK, HW), lambda n: (n, 0, 0)),
                pl.BlockSpec((Cout, KH * KW * CK), lambda n: (0, 0)),
                pl.BlockSpec((Cout, 1), lambda n: (0, 0)),
            ],
            out_specs=pl.BlockSpec((NB, Cout, HW), lambda n: (n, 0, 0)),
        ),
        compiler_params=pltpu.CompilerParams(
            dimension_semantics=("parallel",),
            vmem_limit_bytes=32 * 1024 * 1024,
        ),
    )(x_flat, w_fused, b2d)

    return out_flat.reshape(N, Cout, H, W)


def _reference(x_nchw, weight, bias, padding=1):
    out = jax.lax.conv_general_dilated(
        x_nchw, weight,
        window_strides=(1, 1),
        padding=((padding, padding), (padding, padding)),
        dimension_numbers=("NCHW", "OIHW", "NCHW"),
    )
    out = out + bias.reshape(1, -1, 1, 1)
    return jnp.maximum(out, 0.0)


if __name__ == "__main__":
    key = jax.random.PRNGKey(0)
    k_x, k_w, k_b = jax.random.split(key, 3)

    N, Cin, Cout, H, W = 2, 4, 8, 16, 16
    KH = KW = 3

    x = jax.random.normal(k_x, (N, Cin, H, W), dtype=jnp.float32)
    # Deterministic synthetic parameters (Conv2d weight/bias shapes from __init__).
    fan_in = Cin * KH * KW
    bound = 1.0 / (fan_in ** 0.5)
    weight = jax.random.uniform(k_w, (Cout, Cin, KH, KW),
                                minval=-bound, maxval=bound, dtype=jnp.float32)
    bias = jax.random.uniform(k_b, (Cout,), minval=-bound, maxval=bound,
                              dtype=jnp.float32)

    # TODO(synk): norm_layer (BatchNorm) branch of Basic2d not implemented;
    # this covers the default norm_layer=None (conv+bias+ReLU) path.
    out = basic2d_forward(x, weight, bias, padding=1)
    out = jax.block_until_ready(out)

    ref = _reference(x, weight, bias, padding=1)
    assert out.shape == (N, Cout, H, W)
    assert jnp.allclose(out, ref, atol=1e-4, rtol=1e-4), "mismatch vs reference conv"

    print("KERNEL_OK")
</pallas_src>

<mosaic_0001>
module attributes {stable_mosaic.version = 11 : i64} {
  func.func @kernel(%arg0: i32, %arg1: memref<2x8x256xf32, #tpu.memory_space<vmem>>, %arg2: memref<8x72xf32, #tpu.memory_space<vmem>>, %arg3: memref<8x1xf32, #tpu.memory_space<vmem>>, %arg4: memref<2x8x256xf32, #tpu.memory_space<vmem>>) attributes {dimension_semantics = [#tpu.dimension_semantics<parallel>], iteration_bounds = array<i64: 1>, scalar_prefetch = 0 : i64, scratch_operands = 0 : i64, tpu.core_type = #tpu.core_type<tc>, window_params = [{transform_indices = @transform_0, window_bounds = array<i64: 2, 8, 256>}, {pipeline_mode = #tpu.pipeline_mode<synchronous>, transform_indices = @transform_1, window_bounds = array<i64: 8, 72>}, {pipeline_mode = #tpu.pipeline_mode<synchronous>, transform_indices = @transform_2, window_bounds = array<i64: 8, 1>}, {transform_indices = @transform_3, window_bounds = array<i64: 2, 8, 256>}]} {
    %0 = tpu.iota {dimensions = array<i32: 1>} : vector<8x256xi32>
    %c15_i32 = arith.constant 15 : i32
    %1 = vector.broadcast %c15_i32 : i32 to vector<8x256xi32>
    %2 = arith.andi %0, %1 : vector<8x256xi32>
    %c16_i32 = arith.constant 16 : i32
    %3 = vector.broadcast %c16_i32 : i32 to vector<8x256xi32>
    %4 = arith.cmpi sge, %0, %3 : vector<8x256xi32>
    %c1_i32 = arith.constant 1 : i32
    %5 = vector.broadcast %c1_i32 : i32 to vector<8x256xi32>
    %6 = arith.cmpi sge, %2, %5 : vector<8x256xi32>
    %7 = arith.andi %4, %6 : vector<8x256xi1>
    %c16_i32_0 = arith.constant 16 : i32
    %8 = vector.broadcast %c16_i32_0 : i32 to vector<8x256xi32>
    %9 = arith.cmpi sge, %0, %8 : vector<8x256xi32>
    %c16_i32_1 = arith.constant 16 : i32
    %10 = vector.broadcast %c16_i32_1 : i32 to vector<8x256xi32>
    %11 = arith.cmpi sge, %0, %10 : vector<8x256xi32>
    %c15_i32_2 = arith.constant 15 : i32
    %12 = vector.broadcast %c15_i32_2 : i32 to vector<8x256xi32>
    %13 = arith.cmpi slt, %2, %12 : vector<8x256xi32>
    %14 = arith.andi %11, %13 : vector<8x256xi1>
    %c1_i32_3 = arith.constant 1 : i32
    %15 = vector.broadcast %c1_i32_3 : i32 to vector<8x256xi32>
    %16 = arith.cmpi sge, %2, %15 : vector<8x256xi32>
    %c15_i32_4 = arith.constant 15 : i32
    %17 = vector.broadcast %c15_i32_4 : i32 to vector<8x256xi32>
    %18 = arith.cmpi slt, %2, %17 : vector<8x256xi32>
    %c240_i32 = arith.constant 240 : i32
    %19 = vector.broadcast %c240_i32 : i32 to vector<8x256xi32>
    %20 = arith.cmpi slt, %0, %19 : vector<8x256xi32>
    %c1_i32_5 = arith.constant 1 : i32
    %21 = vector.broadcast %c1_i32_5 : i32 to vector<8x256xi32>
    %22 = arith.cmpi sge, %2, %21 : vector<8x256xi32>
    %23 = arith.andi %20, %22 : vector<8x256xi1>
    %c240_i32_6 = arith.constant 240 : i32
    %24 = vector.broadcast %c240_i32_6 : i32 to vector<8x256xi32>
    %25 = arith.cmpi slt, %0, %24 : vector<8x256xi32>
    %c240_i32_7 = arith.constant 240 : i32
    %26 = vector.broadcast %c240_i32_7 : i32 to vector<8x256xi32>
    %27 = arith.cmpi slt, %0, %26 : vector<8x256xi32>
    %c15_i32_8 = arith.constant 15 : i32
    %28 = vector.broadcast %c15_i32_8 : i32 to vector<8x256xi32>
    %29 = arith.cmpi slt, %2, %28 : vector<8x256xi32>
    %30 = arith.andi %27, %29 : vector<8x256xi1>
    %c0 = arith.constant 0 : index
    %c0_9 = arith.constant 0 : index
    %31 = vector.load %arg2[%c0, %c0_9] : memref<8x72xf32, #tpu.memory_space<vmem>>, vector<8x72xf32>
    %c0_10 = arith.constant 0 : index
    %c0_11 = arith.constant 0 : index
    %32 = vector.load %arg3[%c0_10, %c0_11] : memref<8x1xf32, #tpu.memory_space<vmem>>, vector<8x1xf32>
    %c0_12 = arith.constant 0 : index
    %c0_13 = arith.constant 0 : index
    %c0_14 = arith.constant 0 : index
    %33 = vector.load %arg1[%c0_12, %c0_13, %c0_14] : memref<2x8x256xf32, #tpu.memory_space<vmem>>, vector<1x8x256xf32>
    %34 = vector.shape_cast %33 : vector<1x8x256xf32> to vector<8x256xf32>
    %c17_i32 = arith.constant 17 : i32
    %35 = tpu.dynamic_rotate %34 by %c17_i32 dim 1 : vector<8x256xf32>, i32 -> vector<8x256xf32>
    %cst = arith.constant 0.000000e+00 : f32
    %36 = vector.broadcast %cst : f32 to vector<8x256xf32>
    %37 = arith.select %7, %35, %36 : vector<8x256xi1>, vector<8x256xf32>
    %c16_i32_15 = arith.constant 16 : i32
    %38 = tpu.dynamic_rotate %34 by %c16_i32_15 dim 1 : vector<8x256xf32>, i32 -> vector<8x256xf32>
    %cst_16 = arith.constant 0.000000e+00 : f32
    %39 = vector.broadcast %cst_16 : f32 to vector<8x256xf32>
    %40 = arith.select %9, %38, %39 : vector<8x256xi1>, vector<8x256xf32>
    %c15_i32_17 = arith.constant 15 : i32
    %41 = tpu.dynamic_rotate %34 by %c15_i32_17 dim 1 : vector<8x256xf32>, i32 -> vector<8x256xf32>
    %cst_18 = arith.constant 0.000000e+00 : f32
    %42 = vector.broadcast %cst_18 : f32 to vector<8x256xf32>
    %43 = arith.select %14, %41, %42 : vector<8x256xi1>, vector<8x256xf32>
    %c1_i32_19 = arith.constant 1 : i32
    %44 = tpu.dynamic_rotate %34 by %c1_i32_19 dim 1 : vector<8x256xf32>, i32 -> vector<8x256xf32>
    %cst_20 = arith.constant 0.000000e+00 : f32
    %45 = vector.broadcast %cst_20 : f32 to vector<8x256xf32>
    %46 = arith.select %16, %44, %45 : vector<8x256xi1>, vector<8x256xf32>
    %c255_i32 = arith.constant 255 : i32
    %47 = tpu.dynamic_rotate %34 by %c255_i32 dim 1 : vector<8x256xf32>, i32 -> vector<8x256xf32>
    %cst_21 = arith.constant 0.000000e+00 : f32
    %48 = vector.broadcast %cst_21 : f32 to vector<8x256xf32>
    %49 = arith.select %18, %47, %48 : vector<8x256xi1>, vector<8x256xf32>
    %c241_i32 = arith.constant 241 : i32
    %50 = tpu.dynamic_rotate %34 by %c241_i32 dim 1 : vector<8x256xf32>, i32 -> vector<8x256xf32>
    %cst_22 = arith.constant 0.000000e+00 : f32
    %51 = vector.broadcast %cst_22 : f32 to vector<8x256xf32>
    %52 = arith.select %23, %50, %51 : vector<8x256xi1>, vector<8x256xf32>
    %c240_i32_23 = arith.constant 240 : i32
    %53 = tpu.dynamic_rotate %34 by %c240_i32_23 dim 1 : vector<8x256xf32>, i32 -> vector<8x256xf32>
    %cst_24 = arith.constant 0.000000e+00 : f32
    %54 = vector.broadcast %cst_24 : f32 to vector<8x256xf32>
    %55 = arith.select %25, %53, %54 : vector<8x256xi1>, vector<8x256xf32>
    %c239_i32 = arith.constant 239 : i32
    %56 = tpu.dynamic_rotate %34 by %c239_i32 dim 1 : vector<8x256xf32>, i32 -> vector<8x256xf32>
    %cst_25 = arith.constant 0.000000e+00 : f32
    %57 = vector.broadcast %cst_25 : f32 to vector<8x256xf32>
    %58 = arith.select %30, %56, %57 : vector<8x256xi1>, vector<8x256xf32>
    %59 = tpu.concatenate %37, %40, %43, %46, %34, %49, %52, %55, %58 in 0 : vector<8x256xf32>, vector<8x256xf32>, vector<8x256xf32>, vector<8x256xf32>, vector<8x256xf32>, vector<8x256xf32>, vector<8x256xf32>, vector<8x256xf32>, vector<8x256xf32> -> vector<72x256xf32>
    %cst_26 = arith.constant dense<0.000000e+00> : vector<8x256xf32>
    %60 = tpu.matmul %31, %59, %cst_26 {dimension_numbers = #tpu.dot_dimension_numbers<[1], [0], [0], [1], [0, 0, 1, 1], [], []>} : vector<8x72xf32>, vector<72x256xf32>, vector<8x256xf32> -> vector<8x256xf32>
    %61 = vector.broadcast %32 : vector<8x1xf32> to vector<8x256xf32>
    %62 = arith.addf %60, %61 : vector<8x256xf32>
    %cst_27 = arith.constant 0.000000e+00 : f32
    %63 = vector.broadcast %cst_27 : f32 to vector<8x256xf32>
    %64 = arith.maximumf %62, %63 : vector<8x256xf32>
    %c0_28 = arith.constant 0 : index
    %c0_29 = arith.constant 0 : index
    %c0_30 = arith.constant 0 : index
    %65 = vector.load %arg4[%c0_28, %c0_29, %c0_30] : memref<2x8x256xf32, #tpu.memory_space<vmem>>, vector<1x8x256xf32>
    %66 = vector.shape_cast %65 : vector<1x8x256xf32> to vector<8x256xf32>
    %67 = vector.shape_cast %64 : vector<8x256xf32> to vector<1x8x256xf32>
    tpu.vector_store %arg4[%c0_28, %c0_29, %c0_30], %67 {strides = array<i32>} : memref<2x8x256xf32, #tpu.memory_space<vmem>>, vector<1x8x256xf32>,
    %c1 = arith.constant 1 : index
    %c0_31 = arith.constant 0 : index
    %c0_32 = arith.constant 0 : index
    %68 = vector.load %arg1[%c1, %c0_31, %c0_32] : memref<2x8x256xf32, #tpu.memory_space<vmem>>, vector<1x8x256xf32>
    %69 = vector.shape_cast %68 : vector<1x8x256xf32> to vector<8x256xf32>
    %c17_i32_33 = arith.constant 17 : i32
    %70 = tpu.dynamic_rotate %69 by %c17_i32_33 dim 1 : vector<8x256xf32>, i32 -> vector<8x256xf32>
    %cst_34 = arith.constant 0.000000e+00 : f32
    %71 = vector.broadcast %cst_34 : f32 to vector<8x256xf32>
    %72 = arith.select %7, %70, %71 : vector<8x256xi1>, vector<8x256xf32>
    %c16_i32_35 = arith.constant 16 : i32
    %73 = tpu.dynamic_rotate %69 by %c16_i32_35 dim 1 : vector<8x256xf32>, i32 -> vector<8x256xf32>
    %cst_36 = arith.constant 0.000000e+00 : f32
    %74 = vector.broadcast %cst_36 : f32 to vector<8x256xf32>
    %75 = arith.select %9, %73, %74 : vector<8x256xi1>, vector<8x256xf32>
    %c15_i32_37 = arith.constant 15 : i32
    %76 = tpu.dynamic_rotate %69 by %c15_i32_37 dim 1 : vector<8x256xf32>, i32 -> vector<8x256xf32>
    %cst_38 = arith.constant 0.000000e+00 : f32
    %77 = vector.broadcast %cst_38 : f32 to vector<8x256xf32>
    %78 = arith.select %14, %76, %77 : vector<8x256xi1>, vector<8x256xf32>
    %c1_i32_39 = arith.constant 1 : i32
    %79 = tpu.dynamic_rotate %69 by %c1_i32_39 dim 1 : vector<8x256xf32>, i32 -> vector<8x256xf32>
    %cst_40 = arith.constant 0.000000e+00 : f32
    %80 = vector.broadcast %cst_40 : f32 to vector<8x256xf32>
    %81 = arith.select %16, %79, %80 : vector<8x256xi1>, vector<8x256xf32>
    %c255_i32_41 = arith.constant 255 : i32
    %82 = tpu.dynamic_rotate %69 by %c255_i32_41 dim 1 : vector<8x256xf32>, i32 -> vector<8x256xf32>
    %cst_42 = arith.constant 0.000000e+00 : f32
    %83 = vector.broadcast %cst_42 : f32 to vector<8x256xf32>
    %84 = arith.select %18, %82, %83 : vector<8x256xi1>, vector<8x256xf32>
    %c241_i32_43 = arith.constant 241 : i32
    %85 = tpu.dynamic_rotate %69 by %c241_i32_43 dim 1 : vector<8x256xf32>, i32 -> vector<8x256xf32>
    %cst_44 = arith.constant 0.000000e+00 : f32
    %86 = vector.broadcast %cst_44 : f32 to vector<8x256xf32>
    %87 = arith.select %23, %85, %86 : vector<8x256xi1>, vector<8x256xf32>
    %c240_i32_45 = arith.constant 240 : i32
    %88 = tpu.dynamic_rotate %69 by %c240_i32_45 dim 1 : vector<8x256xf32>, i32 -> vector<8x256xf32>
    %cst_46 = arith.constant 0.000000e+00 : f32
    %89 = vector.broadcast %cst_46 : f32 to vector<8x256xf32>
    %90 = arith.select %25, %88, %89 : vector<8x256xi1>, vector<8x256xf32>
    %c239_i32_47 = arith.constant 239 : i32
    %91 = tpu.dynamic_rotate %69 by %c239_i32_47 dim 1 : vector<8x256xf32>, i32 -> vector<8x256xf32>
    %cst_48 = arith.constant 0.000000e+00 : f32
    %92 = vector.broadcast %cst_48 : f32 to vector<8x256xf32>
    %93 = arith.select %30, %91, %92 : vector<8x256xi1>, vector<8x256xf32>
    %94 = tpu.concatenate %72, %75, %78, %81, %69, %84, %87, %90, %93 in 0 : vector<8x256xf32>, vector<8x256xf32>, vector<8x256xf32>, vector<8x256xf32>, vector<8x256xf32>, vector<8x256xf32>, vector<8x256xf32>, vector<8x256xf32>, vector<8x256xf32> -> vector<72x256xf32>
    %cst_49 = arith.constant dense<0.000000e+00> : vector<8x256xf32>
    %95 = tpu.matmul %31, %94, %cst_49 {dimension_numbers = #tpu.dot_dimension_numbers<[1], [0], [0], [1], [0, 0, 1, 1], [], []>} : vector<8x72xf32>, vector<72x256xf32>, vector<8x256xf32> -> vector<8x256xf32>
    %96 = vector.broadcast %32 : vector<8x1xf32> to vector<8x256xf32>
    %97 = arith.addf %95, %96 : vector<8x256xf32>
    %cst_50 = arith.constant 0.000000e+00 : f32
    %98 = vector.broadcast %cst_50 : f32 to vector<8x256xf32>
    %99 = arith.maximumf %97, %98 : vector<8x256xf32>
    %c1_51 = arith.constant 1 : index
    %c0_52 = arith.constant 0 : index
    %c0_53 = arith.constant 0 : index
    %100 = vector.load %arg4[%c1_51, %c0_52, %c0_53] : memref<2x8x256xf32, #tpu.memory_space<vmem>>, vector<1x8x256xf32>
    %101 = vector.shape_cast %100 : vector<1x8x256xf32> to vector<8x256xf32>
    %102 = vector.shape_cast %99 : vector<8x256xf32> to vector<1x8x256xf32>
    tpu.vector_store %arg4[%c1_51, %c0_52, %c0_53], %102 {strides = array<i32>} : memref<2x8x256xf32, #tpu.memory_space<vmem>>, vector<1x8x256xf32>,
    return
  }
  func.func @transform_0(%arg0: i32) -> (i32, i32, i32) {
    %c0_i32 = arith.constant 0 : i32
    %c0_i32_0 = arith.constant 0 : i32
    %c0_i32_1 = arith.constant 0 : i32
    return %arg0, %c0_i32, %c0_i32_0 : i32, i32, i32
  }
  func.func @transform_1(%arg0: i32) -> (i32, i32) {
    %c0_i32 = arith.constant 0 : i32
    %c0_i32_0 = arith.constant 0 : i32
    %c0_i32_1 = arith.constant 0 : i32
    return %c0_i32, %c0_i32_0 : i32, i32
  }
  func.func @transform_2(%arg0: i32) -> (i32, i32) {
    %c0_i32 = arith.constant 0 : i32
    %c0_i32_0 = arith.constant 0 : i32
    %c0_i32_1 = arith.constant 0 : i32
    return %c0_i32, %c0_i32_0 : i32, i32
  }
  func.func @transform_3(%arg0: i32) -> (i32, i32, i32) {
    %c0_i32 = arith.constant 0 : i32
    %c0_i32_0 = arith.constant 0 : i32
    %c0_i32_1 = arith.constant 0 : i32
    return %arg0, %c0_i32, %c0_i32_0 : i32, i32, i32
  }
}

</mosaic_0001>

<bundles_post_ra>
// kernel: tpu_custom_call.1
= control target key start
LH: loop header
LB: loop body
LE: loop exit
PB: predicated region body
PF: predicated region fallthrough
CT: control target
= control target key end

     0   :  { %8 = vsyncpa [#allocation3], 0  ;;  %s638_s0 = inlined_call_operand.hbm [shape: f32[2,8,256], index: 0, kind: input, shape index: {}]   ;;  %s639_s1 = inlined_call_operand.vmem [shape: f32[8,72], index: 1, kind: input, shape index: {}]   ;;  %s640_s2 = inlined_call_operand.vmem [shape: f32[8,1], index: 2, kind: input, shape index: {}]   ;;  %s641_s3 = inlined_call_operand.hbm [shape: f32[2,8,256], index: 3, kind: output, shape index: {}]  }
   0x1   :  { %9 = vsyncpa [#allocation4], 0  ;;  %s458_s12 = smov [#allocation2]  }
   0x2   :  { %s15_s13 = sshll.u32 %s458_s12, 4  ;;  %s16_s13 = int_to_ptr.vmem [resolvable:$true] %s15_s13 }
   0x3   :  { %s422_s14 = scalar_lea.vmem %s16_s13, 512  ;;  %p427_p1 = scmp.lt.s32.totalorder %s16_s13, %s16_s13 }
   0x4   :  { %p423_p0 = scmp.ne.s32.totalorder %s16_s13, %s422_s14  ;;  %p428_p2 = scmp.lt.s32.totalorder %s422_s14, %s422_s14 }
   0x6   :  { %p429_p3 = por %p428_p2, %p427_p1 }
   0x8   :  { %p430_p4 = pnand %p429_p3, %p423_p0 }
   0xa   :  { %433 = shalt.err (!%p430_p4)
}
   0xb   :  { %s459_s15 = smov 256   ;;  %s460_s16 = smov 16  }
   0xc   :  { %21 = dma.hbm_to_vmem [thread:$0]  %s638_s0, 512, %s16_s13, [#allocation3], %s459_s15, %s459_s15, %s460_s16  }
   0xd   :  { %454 = dma.done.wait [#allocation3], 512  }
   0xe   :  { %455 = vsyncadd [#allocation3], 4294966784  ;;  %v497_v0 = vld [vmem:[#allocation2 + $0x10] sm:$0xff]  ;;  %v499_v1 = vld [vmem:[#allocation2] sm:$0xff]  ;;  %s461_s19 = smov 111   ;;  %s462_s0 = smov 112   ;;  %v29_v7 = vlaneseq }
   0xf   :  { %269 = vrot.lane.b32.xlu1 %v497_v0, %s461_s19  ;;  %117 = vrot.lane.b32.xlu0 %v499_v1, %s461_s19  ;;  %v503_v2 = vld [vmem:[#allocation2 + $0x18] sm:$0xff]  ;;  %v505_v3 = vld [vmem:[#allocation2 + $0x8] sm:$0xff]  ;;  %s463_s20 = smov 113   ;;  %s464_s21 = smov 127   ;;  %v467_v4 = vmov 0.0   ;;  %v468_v5 = vmov 0  }
  0x10   :  { %s465_s22 = smov 1   ;;  %s466_s23 = smov 15   ;;  %199 = vmatprep.mubr.f32.mxu0 %v467_v4  ;;  %341 = vmatprep.mubr.f32.mxu1 %v467_v4  ;;  %v51_v6 = vld [vmem:[%s640_s2] sm:$0xff]  ;;  %v544_v8 = vand.u32 127, %v29_v7 }
  0x11   :  { %413 = vset.pattern.permute.xlu0 %v468_v5  ;;  %s469_s24 = smov 17   ;;  %v50_v13 = vld [vmem:[%s639_s1] sm:$0xff]  ;;  %s470_s1 = smov [#allocation5]  }
  0x12   :  { %v31_v9 = vadd.s32 128, %v544_v8  ;;  %v32_v14 = vand.u32 15, %v544_v8  ;;  %vm121_vm2 = vcmp.lt.s32.totalorder %v544_v8, 111  ;;  %vm112_vm5 = vcmp.lt.s32.totalorder %v544_v8, 112  ;;  %s358_s28 = sshll.u32 %s470_s1, 4  ;;  %s359_s28 = int_to_ptr.vmem [resolvable:$true] %s358_s28 }
  0x13   :  { %271 = vrot.lane.b32.xlu1 %v503_v2, %s461_s19  ;;  %119 = vrot.lane.b32.xlu0 %v505_v3, %s461_s19  ;;  %vm103_vm7 = vcmp.lt.s32.totalorder %v544_v8, 113  ;;  %vm94_vm10 = vcmp.lt.s32.totalorder %v544_v8, 127  ;;  %vm85_vm11 = vcmp.lt.s32.totalorder %v544_v8, 1  ;;  %vm34_vm12 = vcmp.ge.s32.totalorder %v544_v8, 16  ;;  %s434_s29 = scalar_lea.vmem %s359_s28, 512  ;;  %p439_p6 = scmp.lt.s32.totalorder %s359_s28, %s359_s28 }
  0x14   :  { %v33_v10 = vand.u32 15, %v31_v9  ;;  %vm45_vm1 = vcmp.lt.s32.totalorder %v31_v9, 240  ;;  %vm556_vm4 = vcmp.lt.s32.totalorder %v32_v14, 15  ;;  %vm575_vm9 = vcmp.ge.s32.totalorder %v32_v14, 1  ;;  %p435_p5 = scmp.ne.s32.totalorder %s359_s28, %s434_s29  ;;  %p440_p7 = scmp.lt.s32.totalorder %s434_s29, %s434_s29 }
  0x15   :  { %vm76_vm13 = vcmp.lt.s32.totalorder %v544_v8, 15  ;;  %vm42_vm14 = vmand %vm34_vm12, %vm556_vm4  ;;  %vm67_vm15 = vcmp.lt.s32.totalorder %v544_v8, 16 }
  0x16   :  { %vm547_vm0 = vcmp.lt.s32.totalorder %v33_v10, 15  ;;  %vm566_vm6 = vcmp.ge.s32.totalorder %v33_v10, 1  ;;  %p441_p8 = por %p440_p7, %p439_p6 }
  0x17   :  { %110 = vrot.lane.b32.xlu1 %v505_v3, %s462_s0  ;;  %108 = vrot.lane.b32.xlu0 %v499_v1, %s462_s0  ;;  %vm49_vm3 = vmand %vm45_vm1, %vm547_vm0 }
  0x18   :  { %vm47_vm8 = vmand %vm45_vm1, %vm566_vm6  ;;  %p442_p9 = pnand %p441_p8, %p435_p5 }
  0x1b   :  { %263 = vrot.lane.b32.xlu1 %v503_v2, %s462_s0  ;;  %261 = vrot.lane.b32.xlu0 %v497_v0, %s462_s0 }
  0x1f   :  { %101 = vrot.lane.b32.xlu1 %v505_v3, %s463_s20  ;;  %99 = vrot.lane.b32.xlu0 %v499_v1, %s463_s20 }
  0x23   :  { %255 = vrot.lane.b32.xlu1 %v503_v2, %s463_s20  ;;  %253 = vrot.lane.b32.xlu0 %v497_v0, %s463_s20 }
  0x27   :  { %92 = vrot.lane.b32.xlu1 %v505_v3, %s464_s21  ;;  %90 = vrot.lane.b32.xlu0 %v499_v1, %s464_s21 }
  0x2b   :  { %247 = vrot.lane.b32.xlu1 %v503_v2, %s464_s21  ;;  %245 = vrot.lane.b32.xlu0 %v497_v0, %s464_s21 }
  0x2f   :  { %83 = vrot.lane.b32.xlu1 %v505_v3, %s465_s22  ;;  %81 = vrot.lane.b32.xlu0 %v499_v1, %s465_s22 }
  0x33   :  { %239 = vrot.lane.b32.xlu1 %v503_v2, %s465_s22  ;;  %237 = vrot.lane.b32.xlu0 %v497_v0, %s465_s22 }
  0x37   :  { %74 = vrot.lane.b32.xlu1 %v505_v3, %s466_s23  ;;  %72 = vrot.lane.b32.xlu0 %v499_v1, %s466_s23 }
  0x3b   :  { %231 = vrot.lane.b32.xlu1 %v503_v2, %s466_s23  ;;  %229 = vrot.lane.b32.xlu0 %v497_v0, %s466_s23 }
  0x3f   :  { %65 = vrot.lane.b32.xlu1 %v505_v3, %s460_s16  ;;  %63 = vrot.lane.b32.xlu0 %v499_v1, %s460_s16 }
  0x43   :  { %223 = vrot.lane.b32.xlu1 %v503_v2, %s460_s16  ;;  %221 = vrot.lane.b32.xlu0 %v497_v0, %s460_s16 }
  0x47   :  { %56 = vrot.lane.b32.xlu1 %v505_v3, %s469_s24  ;;  %54 = vrot.lane.b32.xlu0 %v499_v1, %s469_s24 }
  0x4b   :  { %215 = vrot.lane.b32.xlu1 %v503_v2, %s469_s24  ;;  %213 = vrot.lane.b32.xlu0 %v497_v0, %s469_s24 }
  0x4f   :  { %128 = vperm.xlu0 %413, %v51_v6  }
  0x81   :  { %v270_v11 = vpop.permute.xlu1 %269  ;;  %v118_v12 = vpop.permute.xlu0 %117 }
  0x85   :  { %v272_v15 = vpop.permute.xlu1 %271  ;;  %v120_v16 = vpop.permute.xlu0 %119 }
  0x86   :  { %v123_v18 = vsel %vm121_vm2, %v120_v16, %v118_v12  ;;  %v274_v19 = vsel %vm121_vm2, %v272_v15, %v270_v11  ;;  %v122_v20 = vsel %vm121_vm2, %v118_v12, %v120_v16  ;;  %v273_v21 = vsel %vm121_vm2, %v270_v11, %v272_v15 }
  0x87   :  { %370 = vmatprep.subr.msk.mxu0 %vm49_vm3, %v123_v18  ;;  %385 = vmatprep.subr.msk.mxu1 %vm49_vm3, %v274_v19  ;;  %vm131_vm2 = vcmask 588800  }
  0x88   :  { %371 = vmatpush1.msk.msra.mxu0 %vm556_vm4, %v122_v20  ;;  %386 = vmatpush1.msk.msra.mxu1 %vm556_vm4, %v273_v21 }
  0x89   :  { %v111_v22 = vpop.permute.xlu1 %110  ;;  %v109_v23 = vpop.permute.xlu0 %108 }
  0x8a   :  { %v114_v24 = vsel %vm112_vm5, %v111_v22, %v109_v23  ;;  %v113_v25 = vsel %vm112_vm5, %v109_v23, %v111_v22 }
  0x8b   :  { %372 = vmatprep.subr.msk.mxu0 %vm45_vm1, %v114_v24 }
  0x8c   :  { %152 = vmatpush1.msra.mxu0 %v113_v25 }
  0x8d   :  { %v264_v26 = vpop.permute.xlu1 %263  ;;  %v262_v27 = vpop.permute.xlu0 %261 }
  0x8e   :  { %v266_v29 = vsel %vm112_vm5, %v264_v26, %v262_v27  ;;  %v265_v30 = vsel %vm112_vm5, %v262_v27, %v264_v26 }
  0x8f   :  { %387 = vmatprep.subr.msk.mxu1 %vm45_vm1, %v266_v29  ;;  %vm58_vm1 = vcmp.lt.s32.totalorder %v544_v8, 17 }
  0x90   :  { %294 = vmatpush1.msra.mxu1 %v265_v30 }
  0x91   :  { %v102_v31 = vpop.permute.xlu1 %101  ;;  %v100_v32 = vpop.permute.xlu0 %99 }
  0x92   :  { %v104_v34 = vsel %vm103_vm7, %v100_v32, %v102_v31  ;;  %v105_v35 = vsel %vm103_vm7, %v102_v31, %v100_v32 }
  0x93   :  { %373 = vmatprep.subr.msk.mxu0 %vm47_vm8, %v105_v35 }
  0x94   :  { %374 = vmatpush1.msk.msra.mxu0 %vm575_vm9, %v104_v34 }
  0x95   :  { %v256_v36 = vpop.permute.xlu1 %255  ;;  %v254_v37 = vpop.permute.xlu0 %253 }
  0x96   :  { %v257_v38 = vsel %vm103_vm7, %v254_v37, %v256_v36  ;;  %v258_v39 = vsel %vm103_vm7, %v256_v36, %v254_v37 }
  0x97   :  { %388 = vmatprep.subr.msk.mxu1 %vm47_vm8, %v258_v39 }
  0x98   :  { %389 = vmatpush1.msk.msra.mxu1 %vm575_vm9, %v257_v38 }
  0x99   :  { %v93_v40 = vpop.permute.xlu1 %92  ;;  %v91_v41 = vpop.permute.xlu0 %90 }
  0x9a   :  { %v95_v42 = vsel %vm94_vm10, %v91_v41, %v93_v40  ;;  %v96_v43 = vsel %vm94_vm10, %v93_v40, %v91_v41 }
  0x9b   :  { %375 = vmatprep.subr.msk.mxu0 %vm547_vm0, %v96_v43 }
  0x9c   :  { %376 = vmatpush1.msk.msra.mxu0 %vm556_vm4, %v95_v42 }
  0x9d   :  { %v248_v44 = vpop.permute.xlu1 %247  ;;  %v246_v45 = vpop.permute.xlu0 %245  ;;  %157 = vmatprep.subr.mxu0 %v505_v3 }
  0x9e   :  { %v249_v46 = vsel %vm94_vm10, %v246_v45, %v248_v44  ;;  %v250_v47 = vsel %vm94_vm10, %v248_v44, %v246_v45  ;;  %158 = vmatpush1.msra.mxu0 %v499_v1 }
  0x9f   :  { %390 = vmatprep.subr.msk.mxu1 %vm547_vm0, %v250_v47 }
  0xa0   :  { %391 = vmatpush1.msk.msra.mxu1 %vm556_vm4, %v249_v46 }
  0xa1   :  { %v84_v48 = vpop.permute.xlu1 %83  ;;  %v82_v49 = vpop.permute.xlu0 %81  ;;  %299 = vmatprep.subr.mxu1 %v503_v2 }
  0xa2   :  { %v86_v50 = vsel %vm85_vm11, %v82_v49, %v84_v48  ;;  %v87_v51 = vsel %vm85_vm11, %v84_v48, %v82_v49  ;;  %300 = vmatpush1.msra.mxu1 %v497_v0 }
  0xa3   :  { %377 = vmatprep.subr.msk.mxu0 %vm566_vm6, %v86_v50 }
  0xa4   :  { %378 = vmatpush1.msk.msra.mxu0 %vm575_vm9, %v87_v51 }
  0xa5   :  { %v240_v52 = vpop.permute.xlu1 %239  ;;  %v238_v53 = vpop.permute.xlu0 %237 }
  0xa6   :  { %v241_v54 = vsel %vm85_vm11, %v238_v53, %v240_v52  ;;  %v242_v55 = vsel %vm85_vm11, %v240_v52, %v238_v53 }
  0xa7   :  { %392 = vmatprep.subr.msk.mxu1 %vm566_vm6, %v241_v54 }
  0xa8   :  { %393 = vmatpush1.msk.msra.mxu1 %vm575_vm9, %v242_v55 }
  0xa9   :  { %v75_v56 = vpop.permute.xlu1 %74  ;;  %v73_v57 = vpop.permute.xlu0 %72 }
  0xaa   :  { %v77_v58 = vsel %vm76_vm13, %v73_v57, %v75_v56  ;;  %v78_v59 = vsel %vm76_vm13, %v75_v56, %v73_v57 }
  0xab   :  { %379 = vmatprep.subr.msk.mxu0 %vm547_vm0, %v77_v58 }
  0xac   :  { %380 = vmatpush1.msk.msra.mxu0 %vm42_vm14, %v78_v59 }
  0xad   :  { %v232_v60 = vpop.permute.xlu1 %231  ;;  %v230_v61 = vpop.permute.xlu0 %229 }
  0xae   :  { %v233_v62 = vsel %vm76_vm13, %v230_v61, %v232_v60  ;;  %v234_v63 = vsel %vm76_vm13, %v232_v60, %v230_v61 }
  0xaf   :  { %394 = vmatprep.subr.msk.mxu1 %vm547_vm0, %v233_v62  ;;  %vm38_vm0 = vmand %vm34_vm12, %vm575_vm9 }
  0xb0   :  { %395 = vmatpush1.msk.msra.mxu1 %vm42_vm14, %v234_v63 }
  0xb1   :  { %v66_v0 = vpop.permute.xlu1 %65  ;;  %v64_v1 = vpop.permute.xlu0 %63 }
  0xb2   :  { %v69_v2 = vsel %vm67_vm15, %v66_v0, %v64_v1  ;;  %v68_v3 = vsel %vm67_vm15, %v64_v1, %v66_v0 }
  0xb3   :  { %163 = vmatprep.subr.mxu0 %v68_v3 }
  0xb4   :  { %381 = vmatpush1.msk.msra.mxu0 %vm34_vm12, %v69_v2 }
  0xb5   :  { %v224_v4 = vpop.permute.xlu1 %223  ;;  %v222_v5 = vpop.permute.xlu0 %221 }
  0xb6   :  { %v226_v6 = vsel %vm67_vm15, %v224_v4, %v222_v5  ;;  %v225_v7 = vsel %vm67_vm15, %v222_v5, %v224_v4 }
  0xb7   :  { %305 = vmatprep.subr.mxu1 %v225_v7 }
  0xb8   :  { %396 = vmatpush1.msk.msra.mxu1 %vm34_vm12, %v226_v6 }
  0xb9   :  { %v57_v9 = vpop.permute.xlu1 %56  ;;  %v55_v10 = vpop.permute.xlu0 %54 }
  0xba   :  { %v59_v11 = vsel %vm58_vm1, %v55_v10, %v57_v9  ;;  %v60_v12 = vsel %vm58_vm1, %v57_v9, %v55_v10 }
  0xbb   :  { %382 = vmatprep.subr.msk.mxu0 %vm566_vm6, %v59_v11 }
  0xbc   :  { %383 = vmatpush1.msk.msra.mxu0 %vm38_vm0, %v60_v12 }
  0xbd   :  { %v216_v14 = vpop.permute.xlu1 %215  ;;  %v214_v15 = vpop.permute.xlu0 %213  ;;  %384 = vmatmul.mubr.msk.f32.vlgmr.msra.gmra.mxu0 %vm131_vm2, %v50_v13 }
  0xbe   :  { %v217_v16 = vsel %vm58_vm1, %v214_v15, %v216_v14  ;;  %v218_v17 = vsel %vm58_vm1, %v216_v14, %v214_v15 }
  0xbf   :  { %397 = vmatprep.subr.msk.mxu1 %vm566_vm6, %v217_v16 }
  0xc0   :  { %398 = vmatpush1.msk.msra.mxu1 %vm38_vm0, %v218_v17 }
  0xc1   :  { %399 = vmatmul.mubr.msk.f32.vlgmr.msra.gmra.mxu1 %vm131_vm2, %v50_v13 }
  0xca   :  { %v129_v8 = vpop.permute.xlu0 %128 }
 0x17d   :  { %v201_v18 = vpop.f32.mrf.mxu0 }
 0x17e   :  { %v202_v19 = vadd.f32 %v201_v18, %v129_v8 }
 0x17f   :  { %v203_v20 = vpop.f32.mrf.mxu0 }
 0x180   :  { %v206_v21 = vmax.f32 %v202_v19, 0.0  ;;  %v204_v22 = vadd.f32 %v203_v20, %v129_v8 }
 0x181   :  { %v343_v23 = vpop.f32.mrf.mxu1 }
 0x182   :  { %208 = vst [vmem:[#allocation5] sm:$0xff] %v206_v21  ;;  %v207_v24 = vmax.f32 %v204_v22, 0.0  ;;  %v344_v25 = vadd.f32 %v343_v23, %v129_v8 }
 0x183   :  { %v345_v26 = vpop.f32.mrf.mxu1 }
 0x184   :  { %209 = vst [vmem:[#allocation5 + $0x8] sm:$0xff] %v207_v24  ;;  %v348_v27 = vmax.f32 %v344_v25, 0.0  ;;  %v346_v29 = vadd.f32 %v345_v26, %v129_v8 }
 0x186   :  { %351 = vst [vmem:[#allocation5 + $0x10] sm:$0xff] %v348_v27  ;;  %v349_v28 = vmax.f32 %v346_v29, 0.0 }
 0x188   :  { %352 = vst [vmem:[#allocation5 + $0x18] sm:$0xff] %v349_v28 }
 0x189   :  { %445 = shalt.err (!%p442_p9)
}
 0x18a   :  { %364 = dma.vmem_to_hbm [thread:$0]  %s359_s28, 512, %s641_s3, [#allocation4], %s459_s15, %s459_s15, %s460_s16  }
 0x18b   :  { %456 = dma.done.wait [#allocation4], 512  }
 0x18c   :  { %457 = vsyncadd [#allocation4], 4294966784 }
 0x18d   :  { %368 = vsyncpa [#allocation3], 1 }
 0x18e   :  { %369 = vsyncpa [#allocation4], 1 }

</bundles_post_ra>
